<compile_context>
chip_gen: v7x
topology: tpu7x:2x2x1
jax: 0.10.0
libtpu: 0.0.40
codegen_flags: <defaults>
</compile_context>

<pallas_src>
from functools import partial

import jax
import jax.numpy as jnp
from jax import lax
from jax.experimental import pallas as pl
from jax.experimental.pallas import tpu as pltpu


def _fused_attention_kernel(x_ref, masks_ref, w1_ref, b1_ref, w2_ref, b2_ref,
                            o_ref, xpad_ref, *, C, K, W, BHW, pad):
    """One fat grid step = B images lane-concatenated, everything lane-dense.

    x_ref    : (C, BHW)              input block, B images flattened on lanes
    masks_ref: (K*K, BHW)            0/1 tap-validity masks (zero-pad + no
                                     cross-image leakage)
    w*_ref   : (C, K*K*C)            weights, column j = (kh*K + kw)*C_in + c_in
    b*_ref   : (C, 1)                bias column
    o_ref    : (C, BHW)              output block
    xpad_ref : (C, pad + BHW + pad)  f32 VMEM scratch reused by both convs
    """
    center = (K * K) // 2

    # Hoisted single loads (reused by both convs / the gating multiply).
    x = x_ref[...].astype(jnp.float32)                 # (C, BHW)
    masks = masks_ref[...]                             # (K*K, BHW) f32
    w1 = w1_ref[...].astype(jnp.float32)
    w2 = w2_ref[...].astype(jnp.float32)

    # Zero ONLY the two pad margins; the interior is overwritten below by x and
    # later by `hidden`, so full-scratch zeroing is redundant store traffic.
    # Done every step (NOT pl.when(pid==0)): under the "parallel" megacore
    # split each TensorCore owns a private scratch and must init its margins.
    xpad_ref[:, :pad] = jnp.zeros((C, pad), jnp.float32)
    xpad_ref[:, pad + BHW:] = jnp.zeros((C, pad), jnp.float32)

    def conv3x3(w, b_ref):
        # SAME 3x3 conv of the block stored at xpad_ref[:, pad:pad+BHW].
        # Per tap: masked shifted slice, then the C_in contraction on the MXU.
        acc = jnp.broadcast_to(b_ref[...].astype(jnp.float32), (C, BHW))
        for t in range(K * K):
            kh, kw = t // K, t % K
            off = (kh - K // 2) * W + (kw - K // 2)
            tap = xpad_ref[:, pad + off:pad + off + BHW]     # (C, BHW)
            if t != center:                                  # center mask == 1
                tap = tap * masks[t:t + 1, :]
            acc = acc + jnp.dot(w[:, t * C:(t + 1) * C], tap,
                                preferred_element_type=jnp.float32)
        return acc

    # conv1 + ReLU.
    xpad_ref[:, pad:pad + BHW] = x
    hidden = jnp.maximum(conv3x3(w1, b1_ref), 0.0)

    # conv2 + sigmoid, reusing the same padded scratch (margins still zero).
    xpad_ref[:, pad:pad + BHW] = hidden
    z = conv3x3(w2, b2_ref)
    # sigmoid(z) == 0.5 * (tanh(z/2) + 1): keeps the nonlinearity on the EUP.
    attention = 0.5 * (jnp.tanh(0.5 * z) + 1.0)

    o_ref[...] = (x * attention).astype(o_ref.dtype)


def self_attention_forward(x_nchw, w1_oihw, b1, w2_oihw, b2):
    """out = x * sigmoid(conv2(relu(conv1(x)))), matching the PyTorch module."""
    N, C, H, W = x_nchw.shape
    K = w1_oihw.shape[-1]
    HW = H * W

    # Grid-step sizing: 2 fat steps (one per v7x TensorCore) of ceil(N/2)
    # lane-concatenated images each; fall back to a single full-width step if
    # the per-step lane width would not be 128-aligned.
    steps = 2 if N >= 2 else 1
    B = -(-N // steps)
    if (B * HW) % 128 != 0:
        steps, B = 1, N
    Npad = steps * B
    BHW = B * HW
    # Lane-aligned margin covering the largest tap offset (K//2)*(W+1).
    pad = max(128, -(-((K // 2) * (W + 1)) // 128) * 128)

    # Channel-first, lane-dense layout (C, Npad*HW).  The wrapper-side
    # transpose/pad of a few KB is negligible XLA work.
    x_cf = jnp.transpose(x_nchw, (1, 0, 2, 3)).reshape(C, N * HW).astype(jnp.float32)
    if Npad != N:
        x_cf = jnp.pad(x_cf, ((0, 0), (0, (Npad - N) * HW)))

    # OIHW -> (O, KH, KW, I) -> (O, K*K*I): column j = (kh*K + kw)*C_in + c_in.
    w1 = jnp.transpose(w1_oihw, (0, 2, 3, 1)).reshape(C, K * K * C).astype(jnp.float32)
    w2 = jnp.transpose(w2_oihw, (0, 2, 3, 1)).reshape(C, K * K * C).astype(jnp.float32)
    b1c = b1.reshape(C, 1).astype(jnp.float32)
    b2c = b2.reshape(C, 1).astype(jnp.float32)

    # Per-image tap validity masks over flattened HW (emulate SAME zero-pad and
    # cancel cross-image taps), tiled to the B images of one grid step.
    hh, ww = jnp.meshgrid(jnp.arange(H), jnp.arange(W), indexing="ij")
    hh, ww = hh.reshape(-1), ww.reshape(-1)
    rows = []
    for kh in range(K):
        for kw in range(K):
            dh, dw = kh - K // 2, kw - K // 2
            rows.append((hh + dh >= 0) & (hh + dh < H) &
                        (ww + dw >= 0) & (ww + dw < W))
    tap_masks = jnp.tile(jnp.stack(rows).astype(jnp.float32), (1, B))  # (K*K, BHW)

    kernel = partial(_fused_attention_kernel, C=C, K=K, W=W, BHW=BHW, pad=pad)

    out_cf = pl.pallas_call(
        kernel,
        out_shape=jax.ShapeDtypeStruct((C, Npad * HW), x_nchw.dtype),
        grid=(steps,),
        in_specs=[
            pl.BlockSpec((C, BHW), lambda g: (0, g)),
            pl.BlockSpec((K * K, BHW), lambda g: (0, 0)),
            pl.BlockSpec((C, K * K * C), lambda g: (0, 0)),
            pl.BlockSpec((C, 1), lambda g: (0, 0)),
            pl.BlockSpec((C, K * K * C), lambda g: (0, 0)),
            pl.BlockSpec((C, 1), lambda g: (0, 0)),
        ],
        out_specs=pl.BlockSpec((C, BHW), lambda g: (0, g)),
        scratch_shapes=[pltpu.VMEM((C, pad + BHW + pad), jnp.float32)],
        compiler_params=pltpu.CompilerParams(
            dimension_semantics=("parallel",)),
    )(x_cf, tap_masks, w1, b1c, w2, b2c)

    out = out_cf[:, :N * HW].reshape(C, N, H, W)
    return jnp.transpose(out, (1, 0, 2, 3)).astype(x_nchw.dtype)


def _reference_forward(x_nchw, w1_oihw, b1, w2_oihw, b2):
    """Pure-JAX reference (lax conv, NCHW/OIHW), mirrors the PyTorch module."""
    dn = ("NCHW", "OIHW", "NCHW")

    def conv(v, w, b):
        y = lax.conv_general_dilated(v, w, window_strides=(1, 1),
                                     padding=((1, 1), (1, 1)),
                                     dimension_numbers=dn,
                                     precision=lax.Precision.HIGHEST)
        return y + b.reshape(1, -1, 1, 1)

    att = jax.nn.relu(conv(x_nchw, w1_oihw, b1))
    att = jax.nn.sigmoid(conv(att, w2_oihw, b2))
    return x_nchw * att


if __name__ == "__main__":
    nFeat, K = 4, 3
    N, H, W = 2, 16, 16

    key = jax.random.PRNGKey(0)
    kx, kw1, kb1, kw2, kb2 = jax.random.split(key, 5)

    x = jax.random.normal(kx, (N, nFeat, H, W), dtype=jnp.float32)
    # Deterministic synthetic params, PyTorch Conv2d shapes: (out, in, kH, kW).
    fan_in = nFeat * K * K
    scale = 1.0 / (fan_in ** 0.5)
    w1 = jax.random.uniform(kw1, (nFeat, nFeat, K, K), jnp.float32, -scale, scale)
    b1 = jax.random.uniform(kb1, (nFeat,), jnp.float32, -scale, scale)
    w2 = jax.random.uniform(kw2, (nFeat, nFeat, K, K), jnp.float32, -scale, scale)
    b2 = jax.random.uniform(kb2, (nFeat,), jnp.float32, -scale, scale)

    out = jax.block_until_ready(self_attention_forward(x, w1, b1, w2, b2))
    ref = jax.block_until_ready(_reference_forward(x, w1, b1, w2, b2))

    assert out.shape == (N, nFeat, H, W), out.shape
    # Tolerance 2e-3: the in-kernel channel contraction runs on the MXU at
    # default matmul precision (bf16 passes on v5e/v6e); genuine logic bugs
    # (tap/mask/weight-order errors) show up as O(0.1) differences.
    assert jnp.allclose(out, ref, atol=2e-3, rtol=2e-3), \
        float(jnp.max(jnp.abs(out - ref)))
    print("KERNEL_OK")
</pallas_src>

<mosaic_0001>
module attributes {stable_mosaic.version = 11 : i64} {
  func.func @_fused_attention_kernel(%arg0: i32, %arg1: memref<4x256xf32, #tpu.memory_space<vmem>>, %arg2: memref<9x256xf32, #tpu.memory_space<vmem>>, %arg3: memref<4x36xf32, #tpu.memory_space<vmem>>, %arg4: memref<4x1xf32, #tpu.memory_space<vmem>>, %arg5: memref<4x36xf32, #tpu.memory_space<vmem>>, %arg6: memref<4x1xf32, #tpu.memory_space<vmem>>, %arg7: memref<4x256xf32, #tpu.memory_space<vmem>>, %arg8: memref<4x512xf32, #tpu.memory_space<vmem>>) attributes {dimension_semantics = [#tpu.dimension_semantics<parallel>], iteration_bounds = array<i64: 2>, scalar_prefetch = 0 : i64, scratch_operands = 1 : i64, tpu.core_type = #tpu.core_type<tc>, window_params = [{transform_indices = @transform_0, window_bounds = array<i64: 4, 256>}, {pipeline_mode = #tpu.pipeline_mode<synchronous>, transform_indices = @transform_1, window_bounds = array<i64: 9, 256>}, {pipeline_mode = #tpu.pipeline_mode<synchronous>, transform_indices = @transform_2, window_bounds = array<i64: 4, 36>}, {pipeline_mode = #tpu.pipeline_mode<synchronous>, transform_indices = @transform_3, window_bounds = array<i64: 4, 1>}, {pipeline_mode = #tpu.pipeline_mode<synchronous>, transform_indices = @transform_4, window_bounds = array<i64: 4, 36>}, {pipeline_mode = #tpu.pipeline_mode<synchronous>, transform_indices = @transform_5, window_bounds = array<i64: 4, 1>}, {transform_indices = @transform_6, window_bounds = array<i64: 4, 256>}]} {
    %c0 = arith.constant 0 : index
    %c0_0 = arith.constant 0 : index
    %0 = vector.load %arg1[%c0, %c0_0] : memref<4x256xf32, #tpu.memory_space<vmem>>, vector<4x256xf32>
    %c0_1 = arith.constant 0 : index
    %c0_2 = arith.constant 0 : index
    %1 = vector.load %arg2[%c0_1, %c0_2] : memref<9x256xf32, #tpu.memory_space<vmem>>, vector<9x256xf32>
    %c0_3 = arith.constant 0 : index
    %c0_4 = arith.constant 0 : index
    %2 = vector.load %arg3[%c0_3, %c0_4] : memref<4x36xf32, #tpu.memory_space<vmem>>, vector<4x36xf32>
    %c0_5 = arith.constant 0 : index
    %c0_6 = arith.constant 0 : index
    %3 = vector.load %arg5[%c0_5, %c0_6] : memref<4x36xf32, #tpu.memory_space<vmem>>, vector<4x36xf32>
    %cst = arith.constant 0.000000e+00 : f32
    %4 = vector.broadcast %cst : f32 to vector<4x128xf32>
    %c0_7 = arith.constant 0 : index
    %c0_8 = arith.constant 0 : index
    %5 = vector.load %arg8[%c0_7, %c0_8] : memref<4x512xf32, #tpu.memory_space<vmem>>, vector<4x128xf32>
    tpu.vector_store %arg8[%c0_7, %c0_8], %4 {strides = array<i32>} : memref<4x512xf32, #tpu.memory_space<vmem>>, vector<4x128xf32>,
    %cst_9 = arith.constant 0.000000e+00 : f32
    %6 = vector.broadcast %cst_9 : f32 to vector<4x128xf32>
    %c0_10 = arith.constant 0 : index
    %c384 = arith.constant 384 : index
    %7 = vector.load %arg8[%c0_10, %c384] : memref<4x512xf32, #tpu.memory_space<vmem>>, vector<4x128xf32>
    tpu.vector_store %arg8[%c0_10, %c384], %6 {strides = array<i32>} : memref<4x512xf32, #tpu.memory_space<vmem>>, vector<4x128xf32>,
    %c0_11 = arith.constant 0 : index
    %c128 = arith.constant 128 : index
    %8 = vector.load %arg8[%c0_11, %c128] : memref<4x512xf32, #tpu.memory_space<vmem>>, vector<4x256xf32>
    tpu.vector_store %arg8[%c0_11, %c128], %0 {strides = array<i32>} : memref<4x512xf32, #tpu.memory_space<vmem>>, vector<4x256xf32>,
    %c0_12 = arith.constant 0 : index
    %c0_13 = arith.constant 0 : index
    %9 = vector.load %arg4[%c0_12, %c0_13] : memref<4x1xf32, #tpu.memory_space<vmem>>, vector<4x1xf32>
    %10 = vector.shape_cast %9 : vector<4x1xf32> to vector<4x1xf32>
    %11 = vector.broadcast %10 : vector<4x1xf32> to vector<4x256xf32>
    %c0_14 = arith.constant 0 : index
    %c111 = arith.constant 111 : index
    %12 = vector.load %arg8[%c0_14, %c111] : memref<4x512xf32, #tpu.memory_space<vmem>>, vector<4x256xf32>
    %13 = vector.extract_strided_slice %1 {offsets = [0, 0], sizes = [1, 256], strides = [1, 1]} : vector<9x256xf32> to vector<1x256xf32>
    %14 = vector.broadcast %13 : vector<1x256xf32> to vector<4x256xf32>
    %15 = arith.mulf %12, %14 : vector<4x256xf32>
    %16 = vector.extract_strided_slice %2 {offsets = [0, 0], sizes = [4, 4], strides = [1, 1]} : vector<4x36xf32> to vector<4x4xf32>
    %cst_15 = arith.constant dense<0.000000e+00> : vector<4x256xf32>
    %17 = tpu.matmul %16, %15, %cst_15 {dimension_numbers = #tpu.dot_dimension_numbers<[1], [0], [0], [1], [0, 0, 1, 1], [], []>} : vector<4x4xf32>, vector<4x256xf32>, vector<4x256xf32> -> vector<4x256xf32>
    %18 = arith.addf %11, %17 : vector<4x256xf32>
    %c0_16 = arith.constant 0 : index
    %c112 = arith.constant 112 : index
    %19 = vector.load %arg8[%c0_16, %c112] : memref<4x512xf32, #tpu.memory_space<vmem>>, vector<4x256xf32>
    %20 = vector.extract_strided_slice %1 {offsets = [1, 0], sizes = [1, 256], strides = [1, 1]} : vector<9x256xf32> to vector<1x256xf32>
    %21 = vector.broadcast %20 : vector<1x256xf32> to vector<4x256xf32>
    %22 = arith.mulf %19, %21 : vector<4x256xf32>
    %23 = vector.extract_strided_slice %2 {offsets = [0, 4], sizes = [4, 4], strides = [1, 1]} : vector<4x36xf32> to vector<4x4xf32>
    %cst_17 = arith.constant dense<0.000000e+00> : vector<4x256xf32>
    %24 = tpu.matmul %23, %22, %cst_17 {dimension_numbers = #tpu.dot_dimension_numbers<[1], [0], [0], [1], [0, 0, 1, 1], [], []>} : vector<4x4xf32>, vector<4x256xf32>, vector<4x256xf32> -> vector<4x256xf32>
    %25 = arith.addf %18, %24 : vector<4x256xf32>
    %c0_18 = arith.constant 0 : index
    %c113 = arith.constant 113 : index
    %26 = vector.load %arg8[%c0_18, %c113] : memref<4x512xf32, #tpu.memory_space<vmem>>, vector<4x256xf32>
    %27 = vector.extract_strided_slice %1 {offsets = [2, 0], sizes = [1, 256], strides = [1, 1]} : vector<9x256xf32> to vector<1x256xf32>
    %28 = vector.broadcast %27 : vector<1x256xf32> to vector<4x256xf32>
    %29 = arith.mulf %26, %28 : vector<4x256xf32>
    %30 = vector.extract_strided_slice %2 {offsets = [0, 8], sizes = [4, 4], strides = [1, 1]} : vector<4x36xf32> to vector<4x4xf32>
    %cst_19 = arith.constant dense<0.000000e+00> : vector<4x256xf32>
    %31 = tpu.matmul %30, %29, %cst_19 {dimension_numbers = #tpu.dot_dimension_numbers<[1], [0], [0], [1], [0, 0, 1, 1], [], []>} : vector<4x4xf32>, vector<4x256xf32>, vector<4x256xf32> -> vector<4x256xf32>
    %32 = arith.addf %25, %31 : vector<4x256xf32>
    %c0_20 = arith.constant 0 : index
    %c127 = arith.constant 127 : index
    %33 = vector.load %arg8[%c0_20, %c127] : memref<4x512xf32, #tpu.memory_space<vmem>>, vector<4x256xf32>
    %34 = vector.extract_strided_slice %1 {offsets = [3, 0], sizes = [1, 256], strides = [1, 1]} : vector<9x256xf32> to vector<1x256xf32>
    %35 = vector.broadcast %34 : vector<1x256xf32> to vector<4x256xf32>
    %36 = arith.mulf %33, %35 : vector<4x256xf32>
    %37 = vector.extract_strided_slice %2 {offsets = [0, 12], sizes = [4, 4], strides = [1, 1]} : vector<4x36xf32> to vector<4x4xf32>
    %cst_21 = arith.constant dense<0.000000e+00> : vector<4x256xf32>
    %38 = tpu.matmul %37, %36, %cst_21 {dimension_numbers = #tpu.dot_dimension_numbers<[1], [0], [0], [1], [0, 0, 1, 1], [], []>} : vector<4x4xf32>, vector<4x256xf32>, vector<4x256xf32> -> vector<4x256xf32>
    %39 = arith.addf %32, %38 : vector<4x256xf32>
    %c0_22 = arith.constant 0 : index
    %c128_23 = arith.constant 128 : index
    %40 = vector.load %arg8[%c0_22, %c128_23] : memref<4x512xf32, #tpu.memory_space<vmem>>, vector<4x256xf32>
    %41 = vector.extract_strided_slice %2 {offsets = [0, 16], sizes = [4, 4], strides = [1, 1]} : vector<4x36xf32> to vector<4x4xf32>
    %cst_24 = arith.constant dense<0.000000e+00> : vector<4x256xf32>
    %42 = tpu.matmul %41, %40, %cst_24 {dimension_numbers = #tpu.dot_dimension_numbers<[1], [0], [0], [1], [0, 0, 1, 1], [], []>} : vector<4x4xf32>, vector<4x256xf32>, vector<4x256xf32> -> vector<4x256xf32>
    %43 = arith.addf %39, %42 : vector<4x256xf32>
    %c0_25 = arith.constant 0 : index
    %c129 = arith.constant 129 : index
    %44 = vector.load %arg8[%c0_25, %c129] : memref<4x512xf32, #tpu.memory_space<vmem>>, vector<4x256xf32>
    %45 = vector.extract_strided_slice %1 {offsets = [5, 0], sizes = [1, 256], strides = [1, 1]} : vector<9x256xf32> to vector<1x256xf32>
    %46 = vector.broadcast %45 : vector<1x256xf32> to vector<4x256xf32>
    %47 = arith.mulf %44, %46 : vector<4x256xf32>
    %48 = vector.extract_strided_slice %2 {offsets = [0, 20], sizes = [4, 4], strides = [1, 1]} : vector<4x36xf32> to vector<4x4xf32>
    %cst_26 = arith.constant dense<0.000000e+00> : vector<4x256xf32>
    %49 = tpu.matmul %48, %47, %cst_26 {dimension_numbers = #tpu.dot_dimension_numbers<[1], [0], [0], [1], [0, 0, 1, 1], [], []>} : vector<4x4xf32>, vector<4x256xf32>, vector<4x256xf32> -> vector<4x256xf32>
    %50 = arith.addf %43, %49 : vector<4x256xf32>
    %c0_27 = arith.constant 0 : index
    %c143 = arith.constant 143 : index
    %51 = vector.load %arg8[%c0_27, %c143] : memref<4x512xf32, #tpu.memory_space<vmem>>, vector<4x256xf32>
    %52 = vector.extract_strided_slice %1 {offsets = [6, 0], sizes = [1, 256], strides = [1, 1]} : vector<9x256xf32> to vector<1x256xf32>
    %53 = vector.broadcast %52 : vector<1x256xf32> to vector<4x256xf32>
    %54 = arith.mulf %51, %53 : vector<4x256xf32>
    %55 = vector.extract_strided_slice %2 {offsets = [0, 24], sizes = [4, 4], strides = [1, 1]} : vector<4x36xf32> to vector<4x4xf32>
    %cst_28 = arith.constant dense<0.000000e+00> : vector<4x256xf32>
    %56 = tpu.matmul %55, %54, %cst_28 {dimension_numbers = #tpu.dot_dimension_numbers<[1], [0], [0], [1], [0, 0, 1, 1], [], []>} : vector<4x4xf32>, vector<4x256xf32>, vector<4x256xf32> -> vector<4x256xf32>
    %57 = arith.addf %50, %56 : vector<4x256xf32>
    %c0_29 = arith.constant 0 : index
    %c144 = arith.constant 144 : index
    %58 = vector.load %arg8[%c0_29, %c144] : memref<4x512xf32, #tpu.memory_space<vmem>>, vector<4x256xf32>
    %59 = vector.extract_strided_slice %1 {offsets = [7, 0], sizes = [1, 256], strides = [1, 1]} : vector<9x256xf32> to vector<1x256xf32>
    %60 = vector.broadcast %59 : vector<1x256xf32> to vector<4x256xf32>
    %61 = arith.mulf %58, %60 : vector<4x256xf32>
    %62 = vector.extract_strided_slice %2 {offsets = [0, 28], sizes = [4, 4], strides = [1, 1]} : vector<4x36xf32> to vector<4x4xf32>
    %cst_30 = arith.constant dense<0.000000e+00> : vector<4x256xf32>
    %63 = tpu.matmul %62, %61, %cst_30 {dimension_numbers = #tpu.dot_dimension_numbers<[1], [0], [0], [1], [0, 0, 1, 1], [], []>} : vector<4x4xf32>, vector<4x256xf32>, vector<4x256xf32> -> vector<4x256xf32>
    %64 = arith.addf %57, %63 : vector<4x256xf32>
    %c0_31 = arith.constant 0 : index
    %c145 = arith.constant 145 : index
    %65 = vector.load %arg8[%c0_31, %c145] : memref<4x512xf32, #tpu.memory_space<vmem>>, vector<4x256xf32>
    %66 = vector.extract_strided_slice %1 {offsets = [8, 0], sizes = [1, 256], strides = [1, 1]} : vector<9x256xf32> to vector<1x256xf32>
    %67 = vector.broadcast %66 : vector<1x256xf32> to vector<4x256xf32>
    %68 = arith.mulf %65, %67 : vector<4x256xf32>
    %69 = vector.extract_strided_slice %2 {offsets = [0, 32], sizes = [4, 4], strides = [1, 1]} : vector<4x36xf32> to vector<4x4xf32>
    %cst_32 = arith.constant dense<0.000000e+00> : vector<4x256xf32>
    %70 = tpu.matmul %69, %68, %cst_32 {dimension_numbers = #tpu.dot_dimension_numbers<[1], [0], [0], [1], [0, 0, 1, 1], [], []>} : vector<4x4xf32>, vector<4x256xf32>, vector<4x256xf32> -> vector<4x256xf32>
    %71 = arith.addf %64, %70 : vector<4x256xf32>
    %cst_33 = arith.constant 0.000000e+00 : f32
    %72 = vector.broadcast %cst_33 : f32 to vector<4x256xf32>
    %73 = arith.maximumf %71, %72 : vector<4x256xf32>
    %c0_34 = arith.constant 0 : index
    %c128_35 = arith.constant 128 : index
    %74 = vector.load %arg8[%c0_34, %c128_35] : memref<4x512xf32, #tpu.memory_space<vmem>>, vector<4x256xf32>
    tpu.vector_store %arg8[%c0_34, %c128_35], %73 {strides = array<i32>} : memref<4x512xf32, #tpu.memory_space<vmem>>, vector<4x256xf32>,
    %c0_36 = arith.constant 0 : index
    %c0_37 = arith.constant 0 : index
    %75 = vector.load %arg6[%c0_36, %c0_37] : memref<4x1xf32, #tpu.memory_space<vmem>>, vector<4x1xf32>
    %76 = vector.shape_cast %75 : vector<4x1xf32> to vector<4x1xf32>
    %77 = vector.broadcast %76 : vector<4x1xf32> to vector<4x256xf32>
    %c0_38 = arith.constant 0 : index
    %c111_39 = arith.constant 111 : index
    %78 = vector.load %arg8[%c0_38, %c111_39] : memref<4x512xf32, #tpu.memory_space<vmem>>, vector<4x256xf32>
    %79 = vector.extract_strided_slice %1 {offsets = [0, 0], sizes = [1, 256], strides = [1, 1]} : vector<9x256xf32> to vector<1x256xf32>
    %80 = vector.broadcast %79 : vector<1x256xf32> to vector<4x256xf32>
    %81 = arith.mulf %78, %80 : vector<4x256xf32>
    %82 = vector.extract_strided_slice %3 {offsets = [0, 0], sizes = [4, 4], strides = [1, 1]} : vector<4x36xf32> to vector<4x4xf32>
    %cst_40 = arith.constant dense<0.000000e+00> : vector<4x256xf32>
    %83 = tpu.matmul %82, %81, %cst_40 {dimension_numbers = #tpu.dot_dimension_numbers<[1], [0], [0], [1], [0, 0, 1, 1], [], []>} : vector<4x4xf32>, vector<4x256xf32>, vector<4x256xf32> -> vector<4x256xf32>
    %84 = arith.addf %77, %83 : vector<4x256xf32>
    %c0_41 = arith.constant 0 : index
    %c112_42 = arith.constant 112 : index
    %85 = vector.load %arg8[%c0_41, %c112_42] : memref<4x512xf32, #tpu.memory_space<vmem>>, vector<4x256xf32>
    %86 = vector.extract_strided_slice %1 {offsets = [1, 0], sizes = [1, 256], strides = [1, 1]} : vector<9x256xf32> to vector<1x256xf32>
    %87 = vector.broadcast %86 : vector<1x256xf32> to vector<4x256xf32>
    %88 = arith.mulf %85, %87 : vector<4x256xf32>
    %89 = vector.extract_strided_slice %3 {offsets = [0, 4], sizes = [4, 4], strides = [1, 1]} : vector<4x36xf32> to vector<4x4xf32>
    %cst_43 = arith.constant dense<0.000000e+00> : vector<4x256xf32>
    %90 = tpu.matmul %89, %88, %cst_43 {dimension_numbers = #tpu.dot_dimension_numbers<[1], [0], [0], [1], [0, 0, 1, 1], [], []>} : vector<4x4xf32>, vector<4x256xf32>, vector<4x256xf32> -> vector<4x256xf32>
    %91 = arith.addf %84, %90 : vector<4x256xf32>
    %c0_44 = arith.constant 0 : index
    %c113_45 = arith.constant 113 : index
    %92 = vector.load %arg8[%c0_44, %c113_45] : memref<4x512xf32, #tpu.memory_space<vmem>>, vector<4x256xf32>
    %93 = vector.extract_strided_slice %1 {offsets = [2, 0], sizes = [1, 256], strides = [1, 1]} : vector<9x256xf32> to vector<1x256xf32>
    %94 = vector.broadcast %93 : vector<1x256xf32> to vector<4x256xf32>
    %95 = arith.mulf %92, %94 : vector<4x256xf32>
    %96 = vector.extract_strided_slice %3 {offsets = [0, 8], sizes = [4, 4], strides = [1, 1]} : vector<4x36xf32> to vector<4x4xf32>
    %cst_46 = arith.constant dense<0.000000e+00> : vector<4x256xf32>
    %97 = tpu.matmul %96, %95, %cst_46 {dimension_numbers = #tpu.dot_dimension_numbers<[1], [0], [0], [1], [0, 0, 1, 1], [], []>} : vector<4x4xf32>, vector<4x256xf32>, vector<4x256xf32> -> vector<4x256xf32>
    %98 = arith.addf %91, %97 : vector<4x256xf32>
    %c0_47 = arith.constant 0 : index
    %c127_48 = arith.constant 127 : index
    %99 = vector.load %arg8[%c0_47, %c127_48] : memref<4x512xf32, #tpu.memory_space<vmem>>, vector<4x256xf32>
    %100 = vector.extract_strided_slice %1 {offsets = [3, 0], sizes = [1, 256], strides = [1, 1]} : vector<9x256xf32> to vector<1x256xf32>
    %101 = vector.broadcast %100 : vector<1x256xf32> to vector<4x256xf32>
    %102 = arith.mulf %99, %101 : vector<4x256xf32>
    %103 = vector.extract_strided_slice %3 {offsets = [0, 12], sizes = [4, 4], strides = [1, 1]} : vector<4x36xf32> to vector<4x4xf32>
    %cst_49 = arith.constant dense<0.000000e+00> : vector<4x256xf32>
    %104 = tpu.matmul %103, %102, %cst_49 {dimension_numbers = #tpu.dot_dimension_numbers<[1], [0], [0], [1], [0, 0, 1, 1], [], []>} : vector<4x4xf32>, vector<4x256xf32>, vector<4x256xf32> -> vector<4x256xf32>
    %105 = arith.addf %98, %104 : vector<4x256xf32>
    %c0_50 = arith.constant 0 : index
    %c128_51 = arith.constant 128 : index
    %106 = vector.load %arg8[%c0_50, %c128_51] : memref<4x512xf32, #tpu.memory_space<vmem>>, vector<4x256xf32>
    %107 = vector.extract_strided_slice %3 {offsets = [0, 16], sizes = [4, 4], strides = [1, 1]} : vector<4x36xf32> to vector<4x4xf32>
    %cst_52 = arith.constant dense<0.000000e+00> : vector<4x256xf32>
    %108 = tpu.matmul %107, %106, %cst_52 {dimension_numbers = #tpu.dot_dimension_numbers<[1], [0], [0], [1], [0, 0, 1, 1], [], []>} : vector<4x4xf32>, vector<4x256xf32>, vector<4x256xf32> -> vector<4x256xf32>
    %109 = arith.addf %105, %108 : vector<4x256xf32>
    %c0_53 = arith.constant 0 : index
    %c129_54 = arith.constant 129 : index
    %110 = vector.load %arg8[%c0_53, %c129_54] : memref<4x512xf32, #tpu.memory_space<vmem>>, vector<4x256xf32>
    %111 = vector.extract_strided_slice %1 {offsets = [5, 0], sizes = [1, 256], strides = [1, 1]} : vector<9x256xf32> to vector<1x256xf32>
    %112 = vector.broadcast %111 : vector<1x256xf32> to vector<4x256xf32>
    %113 = arith.mulf %110, %112 : vector<4x256xf32>
    %114 = vector.extract_strided_slice %3 {offsets = [0, 20], sizes = [4, 4], strides = [1, 1]} : vector<4x36xf32> to vector<4x4xf32>
    %cst_55 = arith.constant dense<0.000000e+00> : vector<4x256xf32>
    %115 = tpu.matmul %114, %113, %cst_55 {dimension_numbers = #tpu.dot_dimension_numbers<[1], [0], [0], [1], [0, 0, 1, 1], [], []>} : vector<4x4xf32>, vector<4x256xf32>, vector<4x256xf32> -> vector<4x256xf32>
    %116 = arith.addf %109, %115 : vector<4x256xf32>
    %c0_56 = arith.constant 0 : index
    %c143_57 = arith.constant 143 : index
    %117 = vector.load %arg8[%c0_56, %c143_57] : memref<4x512xf32, #tpu.memory_space<vmem>>, vector<4x256xf32>
    %118 = vector.extract_strided_slice %1 {offsets = [6, 0], sizes = [1, 256], strides = [1, 1]} : vector<9x256xf32> to vector<1x256xf32>
    %119 = vector.broadcast %118 : vector<1x256xf32> to vector<4x256xf32>
    %120 = arith.mulf %117, %119 : vector<4x256xf32>
    %121 = vector.extract_strided_slice %3 {offsets = [0, 24], sizes = [4, 4], strides = [1, 1]} : vector<4x36xf32> to vector<4x4xf32>
    %cst_58 = arith.constant dense<0.000000e+00> : vector<4x256xf32>
    %122 = tpu.matmul %121, %120, %cst_58 {dimension_numbers = #tpu.dot_dimension_numbers<[1], [0], [0], [1], [0, 0, 1, 1], [], []>} : vector<4x4xf32>, vector<4x256xf32>, vector<4x256xf32> -> vector<4x256xf32>
    %123 = arith.addf %116, %122 : vector<4x256xf32>
    %c0_59 = arith.constant 0 : index
    %c144_60 = arith.constant 144 : index
    %124 = vector.load %arg8[%c0_59, %c144_60] : memref<4x512xf32, #tpu.memory_space<vmem>>, vector<4x256xf32>
    %125 = vector.extract_strided_slice %1 {offsets = [7, 0], sizes = [1, 256], strides = [1, 1]} : vector<9x256xf32> to vector<1x256xf32>
    %126 = vector.broadcast %125 : vector<1x256xf32> to vector<4x256xf32>
    %127 = arith.mulf %124, %126 : vector<4x256xf32>
    %128 = vector.extract_strided_slice %3 {offsets = [0, 28], sizes = [4, 4], strides = [1, 1]} : vector<4x36xf32> to vector<4x4xf32>
    %cst_61 = arith.constant dense<0.000000e+00> : vector<4x256xf32>
    %129 = tpu.matmul %128, %127, %cst_61 {dimension_numbers = #tpu.dot_dimension_numbers<[1], [0], [0], [1], [0, 0, 1, 1], [], []>} : vector<4x4xf32>, vector<4x256xf32>, vector<4x256xf32> -> vector<4x256xf32>
    %130 = arith.addf %123, %129 : vector<4x256xf32>
    %c0_62 = arith.constant 0 : index
    %c145_63 = arith.constant 145 : index
    %131 = vector.load %arg8[%c0_62, %c145_63] : memref<4x512xf32, #tpu.memory_space<vmem>>, vector<4x256xf32>
    %132 = vector.extract_strided_slice %1 {offsets = [8, 0], sizes = [1, 256], strides = [1, 1]} : vector<9x256xf32> to vector<1x256xf32>
    %133 = vector.broadcast %132 : vector<1x256xf32> to vector<4x256xf32>
    %134 = arith.mulf %131, %133 : vector<4x256xf32>
    %135 = vector.extract_strided_slice %3 {offsets = [0, 32], sizes = [4, 4], strides = [1, 1]} : vector<4x36xf32> to vector<4x4xf32>
    %cst_64 = arith.constant dense<0.000000e+00> : vector<4x256xf32>
    %136 = tpu.matmul %135, %134, %cst_64 {dimension_numbers = #tpu.dot_dimension_numbers<[1], [0], [0], [1], [0, 0, 1, 1], [], []>} : vector<4x4xf32>, vector<4x256xf32>, vector<4x256xf32> -> vector<4x256xf32>
    %137 = arith.addf %130, %136 : vector<4x256xf32>
    %cst_65 = arith.constant 5.000000e-01 : f32
    %138 = vector.broadcast %cst_65 : f32 to vector<4x256xf32>
    %139 = arith.mulf %138, %137 : vector<4x256xf32>
    %140 = math.tanh %139 : vector<4x256xf32>
    %cst_66 = arith.constant 1.000000e+00 : f32
    %141 = vector.broadcast %cst_66 : f32 to vector<4x256xf32>
    %142 = arith.addf %140, %141 : vector<4x256xf32>
    %cst_67 = arith.constant 5.000000e-01 : f32
    %143 = vector.broadcast %cst_67 : f32 to vector<4x256xf32>
    %144 = arith.mulf %143, %142 : vector<4x256xf32>
    %145 = arith.mulf %0, %144 : vector<4x256xf32>
    %c0_68 = arith.constant 0 : index
    %c0_69 = arith.constant 0 : index
    %146 = vector.load %arg7[%c0_68, %c0_69] : memref<4x256xf32, #tpu.memory_space<vmem>>, vector<4x256xf32>
    tpu.vector_store %arg7[%c0_68, %c0_69], %145 {strides = array<i32>} : memref<4x256xf32, #tpu.memory_space<vmem>>, vector<4x256xf32>,
    return
  }
  func.func @transform_0(%arg0: i32) -> (i32, i32) {
    %c0_i32 = arith.constant 0 : i32
    %c0_i32_0 = arith.constant 0 : i32
    return %c0_i32, %arg0 : i32, i32
  }
  func.func @transform_1(%arg0: i32) -> (i32, i32) {
    %c0_i32 = arith.constant 0 : i32
    %c0_i32_0 = arith.constant 0 : i32
    %c0_i32_1 = arith.constant 0 : i32
    return %c0_i32, %c0_i32_0 : i32, i32
  }
  func.func @transform_2(%arg0: i32) -> (i32, i32) {
    %c0_i32 = arith.constant 0 : i32
    %c0_i32_0 = arith.constant 0 : i32
    %c0_i32_1 = arith.constant 0 : i32
    return %c0_i32, %c0_i32_0 : i32, i32
  }
  func.func @transform_3(%arg0: i32) -> (i32, i32) {
    %c0_i32 = arith.constant 0 : i32
    %c0_i32_0 = arith.constant 0 : i32
    %c0_i32_1 = arith.constant 0 : i32
    return %c0_i32, %c0_i32_0 : i32, i32
  }
  func.func @transform_4(%arg0: i32) -> (i32, i32) {
    %c0_i32 = arith.constant 0 : i32
    %c0_i32_0 = arith.constant 0 : i32
    %c0_i32_1 = arith.constant 0 : i32
    return %c0_i32, %c0_i32_0 : i32, i32
  }
  func.func @transform_5(%arg0: i32) -> (i32, i32) {
    %c0_i32 = arith.constant 0 : i32
    %c0_i32_0 = arith.constant 0 : i32
    %c0_i32_1 = arith.constant 0 : i32
    return %c0_i32, %c0_i32_0 : i32, i32
  }
  func.func @transform_6(%arg0: i32) -> (i32, i32) {
    %c0_i32 = arith.constant 0 : i32
    %c0_i32_0 = arith.constant 0 : i32
    return %c0_i32, %arg0 : i32, i32
  }
}

</mosaic_0001>

<bundles_post_ra>
// kernel: tpu_custom_call.1
= control target key start
LH: loop header
LB: loop body
LE: loop exit
PB: predicated region body
PF: predicated region fallthrough
CT: control target
= control target key end

     0   :  { %11 = vsyncpa [#allocation4], 0  ;;  %s3167_s0 = inlined_call_operand.hbm [shape: f32[4,512], index: 0, kind: input, shape index: {}]   ;;  %s3168_s1 = inlined_call_operand.hbm [shape: f32[9,256], index: 1, kind: input, shape index: {}]   ;;  %s3169_s2 = inlined_call_operand.vmem [shape: f32[4,36], index: 2, kind: input, shape index: {}]   ;;  %s3170_s3 = inlined_call_operand.vmem [shape: f32[4,1], index: 3, kind: input, shape index: {}]   ;;  %s3171_s4 = inlined_call_operand.vmem [shape: f32[4,36], index: 4, kind: input, shape index: {}]   ;;  %s3172_s5 = inlined_call_operand.vmem [shape: f32[4,1], index: 5, kind: input, shape index: {}]   ;;  %s3173_s6 = inlined_call_operand.hbm [shape: f32[4,512], index: 6, kind: output, shape index: {}]  }
   0x1   :  { %13 = vsyncpa [#allocation4 + $0x1], 0 }
   0x2   :  { %14 = vsyncpa [#allocation7], 0 }
   0x3   :  { %15 = vsyncpa [#allocation5], 0 }
   0x4   :  { %17 = vsyncpa [#allocation5 + $0x1], 0  ;;  %s2651_s21 = smov 0   ;;  %s2653_s22 = smov 0  }
   0x5   :  { %s2655_s23 = smov 0   ;;  %s2657_s24 = smov 0  }
   0x6 LB: > { %s2672_s25 = sadd.s32 4294967295, %s2592_s24   ;;  %s2271_s26 = sadd.s32 4294967294, %s2592_s24   ;;  %s2592_s24 = sphi %s2657_s24, %s3202_s24   ;;  %s2588_s23 = sphi %s2655_s23, %s3201_s23   ;;  %s2584_s22 = sphi %s2653_s22, %s3200_s22   ;;  %s2580_s21 = sphi %s2651_s21, %s3199_s21  }
   0x7   : > { %p43_p0 = scmp.ne.s32.totalorder %s2584_s22, %s2580_s21  ;;  %p3174_p1 = scmp.eq.s32.totalorder %s2672_s25, 0 }
   0x8   : > { %p178_p3 = scmp.eq.s32.totalorder %s2271_s26, 1  ;;  %p2272_p5 = scmp.ge.s32.totalorder %s2592_s24, 1 }
   0x9   : > { %p2681_p4 = por %p3174_p1, %p43_p0  ;;  %p185_p7 = scmp.lt.s32.totalorder %s2592_s24, 3 }
   0xa   : > { %p2686_p6 = por %p178_p3, %p43_p0  ;;  %s2594_s30 = smov [#allocation6]  }
   0xb   : > { %s3182_s27 = scalar_select %p2681_p4, 1, 0 }
   0xc   : > { %s3183_s28 = scalar_select %p2686_p6, 1, 0 }
   0xd   : > { %p2691_p8 = pnand %p2272_p5, %p185_p7  ;;  %s197_s7 = sshll.u32 %s2594_s30, 4  ;;  %s2695_s7 = int_to_ptr.vmem [resolvable:$true] %s197_s7 }
   0xe   : > { %s2707_s9 = sadd.s32 1, %s2592_s24   ;;  %s30_s10 = sadd.s32 1, %s2588_s23 }
   0xf   : > { %s3184_s29 = scalar_select %p2691_p8, 1, 0 }
  0x10   : > { %p2389_p9 = pneg %p2691_p8  ;;  %s27_s11 = ssub.s32 %s2592_s24, %s2707_s9 }
  0x11   : > { %s2464_s14 = scalar_lea.hbm %s3168_s1, 512 }
  0x12   : > { %p2702_p11 = pnand %p2389_p9, %p3174_p1  ;;  %p2465_p12 = scmp.ne.s32.totalorder %s3168_s1, %s2464_s14 }
  0x13   : > { %p2471_p5 = scmp.lt.u32.totalorder %s2464_s14, %s3168_s1 }
  0x14   : > { %p2466_p13 = pneg %p2702_p11 }
  0x16   : > { %p2467_p0 = pnand %p2466_p13, %p2465_p12 }
  0x18   : > { %p2468_p3 = pneg %p2467_p0 }
  0x1a   : > { %p2473_p7 = pnand %p2471_p5, %p2468_p3 }
  0x1c   : > { %2476 = shalt.err (!%p2473_p7)
}
  0x1d   : > { %s2477_s19 = scalar_lea.vmem %s2695_s7, 512  ;;  %p2485_p2 = scmp.lt.s32.totalorder %s2695_s7, %s2695_s7 }
  0x1e   : > { %p2478_p9 = scmp.ne.s32.totalorder %s2695_s7, %s2477_s19  ;;  %p2486_p6 = scmp.lt.s32.totalorder %s2477_s19, %s2477_s19 }
  0x20   : > { %p2480_p10 = pnand %p2478_p9, %p2466_p13  ;;  %p2487_p4 = por %p2486_p6, %p2485_p2 }
  0x22   : > { %p2481_p1 = pneg %p2480_p10 }
  0x24   : > { %p2488_p8 = pnand %p2487_p4, %p2481_p1 }
  0x26   : > { %2491 = shalt.err (!%p2488_p8)
}
  0x27   : > { %s2595_s20 = smov 256   ;;  %s2596_s26 = smov 16  }
  0x28   : > { %2392 = dma.hbm_to_vmem [thread:$0]  (!%p2702_p11), %s3168_s1, 512, %s2695_s7, [#allocation7], %s2595_s20, %s2595_s20, %s2596_s26  }
  0x29   : > { %p28_p2 = scmp.eq.s32.totalorder %s27_s11, 0  ;;  %p37_p1 = scmp.ne.s32.totalorder %s2588_s23, %s2584_s22 }
  0x2a   : > { %p38_p4 = scmp.eq.s32.totalorder %s2592_s24, 0  ;;  %p2402_p6 = scmp.lt.s32.totalorder %s2592_s24, 2 }
  0x2b   : > { %s2738_s13 = scalar_select %p28_p2, %s2588_s23, %s30_s10  }
  0x2c   : > { %p39_p8 = por %p38_p4, %p37_p1  ;;  %p3186_p10 = scmp.eq.s32.totalorder %s2672_s25, 1 }
  0x2d   : > { %s223_s15 = sand.u32 1, %s2588_s23   ;;  %s2343_s16 = sshll.u32 %s2592_s24, 7 }
  0x2e   : > { %p2742_p12 = por %p3186_p10, %p37_p1  ;;  %s2275_s17 = sshll.u32 %s223_s15, 3 }
  0x2f   : > { %s2751_s19 = scalar_lea.hbm %s3167_s0, %s2343_s16  ;;  %s227_s7 = scalar_lea.vmem [#allocation3], %s2275_s17 }
  0x30   : > { %s235_s10 = sshll.u32 %s227_s7, 4  ;;  %p2753_p11 = pnand %p2402_p6, %p39_p8  ;;  %s2757_s10 = int_to_ptr.vmem [resolvable:$true] %s235_s10 }
  0x31   : > { %s224_s20 = scalar_lea.sflag [#allocation4], %s223_s15  ;;  %s2492_s26 = scalar_lea.hbm %s2751_s19, 128 }
  0x32   : > { %p2493_p13 = scmp.ne.s32.totalorder %s2751_s19, %s2492_s26  ;;  %p2494_p0 = pneg %p2753_p11 }
  0x33   : > { %s2497_s16 = scalar_lea.hbm %s3167_s0, 256  ;;  %p2498_p7 = scmp.lt.u32.totalorder %s2751_s19, %s3167_s0 }
  0x34   : > { %p2495_p3 = pnand %p2494_p0, %p2493_p13  ;;  %p2499_p9 = scmp.lt.u32.totalorder %s2497_s16, %s2492_s26 }
  0x35   : > { %p2501_p1 = scmp.lt.u32.totalorder %s2492_s26, %s2751_s19 }
  0x36   : > { %p2496_p5 = pneg %p2495_p3  ;;  %p2500_p2 = por %p2499_p9, %p2498_p7 }
  0x38   : > { %p2502_p4 = por %p2501_p1, %p2500_p2 }
  0x3a   : > { %p2503_p6 = pnand %p2502_p4, %p2496_p5 }
  0x3c   : > { %2506 = shalt.err (!%p2503_p6)
}
  0x3d   : > { %s2507_s15 = scalar_lea.vmem %s2757_s10, 128  ;;  %s2597_s18 = smov [#allocation3]  }
  0x3e   : > { %p2508_p8 = scmp.ne.s32.totalorder %s2757_s10, %s2507_s15  ;;  %s2512_s7 = sshll.u32 %s2597_s18, 4  ;;  %s2513_s7 = int_to_ptr.vmem [resolvable:$false] %s2512_s7 }
  0x3f   : > { %s2514_s30 = scalar_lea.vmem %s2513_s7, 256  ;;  %p2515_p3 = scmp.lt.s32.totalorder %s2757_s10, %s2513_s7 }
  0x40   : > { %p2510_p10 = pnand %p2508_p8, %p2494_p0  ;;  %p2516_p7 = scmp.lt.s32.totalorder %s2514_s30, %s2507_s15 }
  0x42   : > { %p2511_p13 = pneg %p2510_p10  ;;  %p2517_p9 = por %p2516_p7, %p2515_p3 }
  0x44   : > { %p2518_p2 = pnand %p2517_p9, %p2511_p13 }
  0x46   : > { %2521 = shalt.err (!%p2518_p2)
}
  0x47   : > { %2396 = dma.hbm_to_vmem [thread:$0]  (!%p2753_p11), %s2751_s19, 128, %s2757_s10, %s224_s20  }
  0x48   : > { %p3189_p5 = scmp.ne.s32.totalorder %s3184_s29, 0 }
  0x49   : > { %s2787_s26 = sand.u32 (!%p3189_p5), 1, %s2584_s22   ;;  %p3190_p0 = scmp.ne.s32.totalorder (!%p3189_p5), %s3182_s27, 0 }
  0x4a   : > { %244 = sbr.rel (%p3189_p5) target bundleno = 1069 (0x42d), region = 44  ;;  %s3177_s12 = sshll.u32 (!%p3189_p5), %s2787_s26, 3 }
  0x4b   : > { %s247_s16 = scalar_lea.sflag (!%p3189_p5), [#allocation4], %s2787_s26  ;;  %s250_s17 = scalar_lea.vmem (!%p3189_p5), [#allocation3], %s3177_s12 }
  0x51   : > { %2567 = dma.done.wait (%p3190_p0), %s247_s16, 128  }
  0x52   : > { %2569 = vsyncadd (%p3190_p0), %s247_s16, 4294967168  ;;  %p3191_p11 = scmp.eq.s32.totalorder %s2672_s25, 0 }
  0x54   : > { %2571 = dma.done.wait (%p3191_p11), [#allocation7], 512   ;;  %p3192_p1 = pmov %p3191_p11 }
  0x55   : > { %v303_v0 = vlaneseq  ;;  %v2598_v1 = vmov 0.0   ;;  %v286_v7 = vld [vmem:[#allocation6] sm:$0xff]  ;;  %v287_v8 = vld [vmem:[#allocation6 + $0x8] sm:$0xff]  ;;  %v2805_v15 = vld [vmem:[%s250_s17] sm:$0xff]  ;;  %s2599_s27 = smov 111   ;;  %s3180_s29 = smov 113  }
  0x56   : > { %2573 = vsyncadd (%p3192_p1), [#allocation7], 4294966784  ;;  %292 = vst [vmem:[#allocation2] sm:$0xf] %v2598_v1  ;;  %408 = vmatprep.mubr.f32.mxu0 %v2598_v1  ;;  %1397 = vmatprep.mubr.f32.mxu1 %v2598_v1  ;;  %s2601_s19 = smov 112   ;;  %s2602_s10 = smov 127  }
  0x57   : > { %293 = vst [vmem:[#allocation2 + $0xc] sm:$0xf] %v2598_v1  ;;  %v304_v2 = vshrl.u32 %v303_v0, 7  ;;  %294 = vst [vmem:[#allocation2 + $0x4] sm:$0xff] %v2805_v15  ;;  %v2306_v33 = vld [vmem:[#allocation6 + $0x10] ss:$0 sm:$0xff] }
  0x58   : > { %v2307_v34 = vld [vmem:[#allocation6 + $0x18] ss:$0 sm:$0xff]  ;;  %s2603_s11 = smov 1   ;;  %s2604_s20 = smov 15   ;;  %vm317_vm0 = vcmask 908288   ;;  %vm433_vm1 = vcmask 916480  }
  0x59   : > { %v305_v3 = vsub.s32 0, %v304_v2  ;;  %v421_v4 = vsub.s32 1, %v304_v2  ;;  %v536_v5 = vsub.s32 2, %v304_v2  ;;  %v651_v6 = vsub.s32 3, %v304_v2  ;;  %s2605_s8 = smov 16   ;;  %s2606_s15 = smov 17  }
  0x5a   : > { %v850_v9 = vsub.s32 5, %v304_v2  ;;  %v963_v10 = vsub.s32 6, %v304_v2  ;;  %v1076_v25 = vsub.s32 7, %v304_v2  ;;  %v1197_v36 = vcombine.low %v2306_v33, %v2307_v34  ;;  %v2854_v60 = vld [vmem:[%s3169_s2] sm:$0xf]  ;;  %s2607_s30 = smov 124  }
  0x5b   : > { %v306_v11 = vrot.slane %v286_v7, %v305_v3  ;;  %v310_v12 = vrot.slane %v287_v8, %v305_v3  ;;  %v422_v13 = vrot.slane %v286_v7, %v421_v4  ;;  %v426_v14 = vrot.slane %v287_v8, %v421_v4  ;;  %s2608_s16 = smov 120   ;;  %s2609_s17 = smov 116   ;;  %v295_v34 = vld [vmem:[%s3170_s3] sm:$0xf] }
  0x5c   : > { %v537_v16 = vrot.slane %v286_v7, %v536_v5  ;;  %v541_v17 = vrot.slane %v287_v8, %v536_v5  ;;  %v652_v18 = vrot.slane %v286_v7, %v651_v6  ;;  %v656_v19 = vrot.slane %v287_v8, %v651_v6  ;;  %s3179_s18 = smov 108   ;;  %s3178_s7 = smov 104  }
  0x5d   : > { %v313_v20 = vcombine.low %v306_v11, %v310_v12  ;;  %v429_v22 = vcombine.low %v422_v13, %v426_v14  ;;  %v851_v23 = vrot.slane %v286_v7, %v850_v9  ;;  %v855_v24 = vrot.slane %v287_v8, %v850_v9  ;;  %s2612_s12 = smov 100  }
  0x5e   : > { %v544_v21 = vcombine.low %v537_v16, %v541_v17  ;;  %v659_v26 = vcombine.low %v652_v18, %v656_v19  ;;  %v964_v27 = vrot.slane %v286_v7, %v963_v10  ;;  %v968_v28 = vrot.slane %v287_v8, %v963_v10  ;;  %v302_v38 = vld [vmem:[#allocation2 + $0x8] sm:$0xf]  ;;  %v301_v39 = vld [vmem:[#allocation2] sm:$0xff]  ;;  %v847_v10 = vld [vmem:[#allocation2 + $0xc] sm:$0xf] }
  0x5f   : > { %314 = vrot.lane.b32.xlu0 %v313_v20, %s2599_s27  ;;  %v858_v29 = vcombine.low %v851_v23, %v855_v24  ;;  %v1077_v30 = vrot.slane %v286_v7, %v1076_v25  ;;  %v1081_v31 = vrot.slane %v287_v8, %v1076_v25  ;;  %vm548_vm2 = vcmask 924672   ;;  %v418_v54 = vld [vmem:[#allocation2 + $0x8] sm:$0xf]  ;;  %v960_v18 = vld [vmem:[#allocation2 + $0xc] sm:$0xf] }
  0x60   : > { %545 = vrot.lane.b32.xlu1 %v544_v21, %s3180_s29  ;;  %v971_v32 = vcombine.low %v964_v27, %v968_v28  ;;  %vm663_vm3 = vcmask 1039360   ;;  %v533_v61 = vld [vmem:[#allocation2 + $0x8] sm:$0xf]  ;;  %vm680_vm4 = vcmask 7168   ;;  %vm565_vm5 = vcmask 121856  }
  0x61   : > { %v1084_v35 = vcombine.low %v1077_v30, %v1081_v31  ;;  %v648_v4 = vld [vmem:[#allocation2 + $0x8] sm:$0xf]  ;;  %vm450_vm6 = vcmask 130048   ;;  %v1073_v25 = vld [vmem:[#allocation2 + $0xc] sm:$0xf]  ;;  %vm332_vm7 = vcmask 138240  }
  0x62   : > { %v1186_v30 = vld [vmem:[#allocation2 + $0xc] sm:$0xf]  ;;  %v2613_v33 = vmov 0   ;;  %vm339_vm8 = vcmask 1043456   ;;  %vm335_vm9 = vcmask 31744  }
  0x63   : > { %430 = vrot.lane.b32.xlu0 %v429_v22, %s2601_s19 }
  0x64   : > { %660 = vrot.lane.b32.xlu1 %v659_v26, %s2602_s10  ;;  %2457 = vset.pattern.permute.xlu0 %v2613_v33 }
  0x67   : > { %859 = vrot.lane.b32.xlu0 %v858_v29, %s2603_s11 }
  0x68   : > { %972 = vrot.lane.b32.xlu1 %v971_v32, %s2604_s20 }
  0x6b   : > { %1085 = vrot.lane.b32.xlu0 %v1084_v35, %s2605_s8 }
  0x6c   : > { %1198 = vrot.lane.b32.xlu1 %v1197_v36, %s2606_s15 }
  0xd1   : > { %v315_v37 = vpop.permute.xlu0 %314 }
  0xd2   : > { %v2816_v40 = vrot.slane %v315_v37, 4  ;;  %v546_v41 = vpop.permute.xlu1 %545 }
  0xd3   : > { %v2827_v47 = vrot.slane %v546_v41, 4 }
  0xd4   : > { %v2820_v42 = vsel %vm317_vm0, %v2816_v40, %v315_v37  ;;  %v322_v43 = vmul.f32 %v2816_v40, %v302_v38 }
  0xd5   : > { %v321_v44 = vmul.f32 %v2820_v42, %v301_v39  ;;  %v431_v45 = vpop.permute.xlu0 %430  ;;  %v2837_v51 = vsel %vm548_vm2, %v2827_v47, %v546_v41  ;;  %v553_v63 = vmul.f32 %v2827_v47, %v533_v61 }
  0xd6   : > { %v2824_v46 = vrot.slane %v431_v45, 4  ;;  %330 = vrot.lane.b32.xlu1 %v322_v43, %s2606_s15  ;;  %v661_v53 = vpop.permute.xlu1 %660  ;;  %v552_v55 = vmul.f32 %v2837_v51, %v301_v39 }
  0xd7   : > { %v325_v48 = vcombine.high %v321_v44, %v321_v44  ;;  %v2842_v56 = vrot.slane %v661_v53, 4 }
  0xd8   : > { %v2831_v49 = vsel %vm433_vm1, %v2824_v46, %v431_v45  ;;  %v438_v57 = vmul.f32 %v2824_v46, %v418_v54  ;;  %v558_v58 = vcombine.high %v552_v55, %v552_v55 }
  0xd9   : > { %v437_v50 = vmul.f32 %v2831_v49, %v301_v39  ;;  %328 = vrot.lane.b32.xlu0 %v325_v48, %s2606_s15  ;;  %v2849_v59 = vsel %vm663_vm3, %v2842_v56, %v661_v53  ;;  %v860_v0 = vpop.permute.xlu0 %859  ;;  %v668_v6 = vmul.f32 %v2842_v56, %v648_v4 }
  0xda   : > { %v667_v62 = vmul.f32 %v2849_v59, %v301_v39  ;;  %v2863_v3 = vrot.slane %v860_v0, 4  ;;  %v973_v7 = vpop.permute.xlu1 %972 }
  0xdb   : > { %v443_v52 = vcombine.high %v437_v50, %v437_v50  ;;  %v2877_v9 = vrot.slane %v973_v7, 4 }
  0xdc   : > { %v673_v2 = vcombine.high %v667_v62, %v667_v62  ;;  %v2870_v5 = vsel %vm680_vm4, %v2863_v3, %v860_v0  ;;  %v866_v12 = vmul.f32 %v2863_v3, %v847_v10 }
  0xdd   : > { %446 = vrot.lane.b32.xlu1 %v443_v52, %s2605_s8  ;;  %326 = vrot.lane.b32.xlu0 %v321_v44, %s2606_s15  ;;  %v865_v8 = vmul.f32 %v2870_v5, %v2805_v15  ;;  %v2886_v13 = vsel %vm565_vm5, %v2877_v9, %v973_v7  ;;  %v1086_v14 = vpop.permute.xlu0 %1085  ;;  %v979_v20 = vmul.f32 %v2877_v9, %v960_v18 }
  0xde   : > { %v978_v16 = vmul.f32 %v2886_v13, %v2805_v15  ;;  %v2892_v17 = vrot.slane %v1086_v14, 4  ;;  %v1199_v22 = vpop.permute.xlu1 %1198 }
  0xdf   : > { %v871_v11 = vcombine.high %v865_v8, %v865_v8  ;;  %v2906_v24 = vrot.slane %v1199_v22, 4 }
  0xe0   : > { %v984_v19 = vcombine.high %v978_v16, %v978_v16  ;;  %v2900_v21 = vsel %vm450_vm6, %v2892_v17, %v1086_v14  ;;  %v1092_v27 = vmul.f32 %v2892_v17, %v1073_v25 }
  0xe1   : > { %444 = vrot.lane.b32.xlu1 %v437_v50, %s2605_s8  ;;  %448 = vrot.lane.b32.xlu0 %v438_v57, %s2605_s8  ;;  %v1091_v23 = vmul.f32 %v2900_v21, %v2805_v15  ;;  %v2914_v28 = vsel %vm332_vm7, %v2906_v24, %v1199_v22  ;;  %v1205_v32 = vmul.f32 %v2906_v24, %v1186_v30 }
  0xe2   : > { %v1204_v29 = vmul.f32 %v2914_v28, %v2805_v15 }
  0xe3   : > { %v1097_v26 = vcombine.high %v1091_v23, %v1091_v23 }
  0xe4   : > { %v1210_v31 = vcombine.high %v1204_v29, %v1204_v29 }
  0xe5   : > { %561 = vrot.lane.b32.xlu1 %v558_v58, %s2604_s20  ;;  %439 = vrot.lane.b32.xlu0 %v2854_v60, %s2607_s30 }
  0xe9   : > { %559 = vrot.lane.b32.xlu1 %v552_v55, %s2604_s20  ;;  %563 = vrot.lane.b32.xlu0 %v553_v63, %s2604_s20  ;;  %v766_v63 = vcombine.high %v2805_v15, %v2805_v15 }
  0xed   : > { %676 = vrot.lane.b32.xlu1 %v673_v2, %s2603_s11  ;;  %554 = vrot.lane.b32.xlu0 %v2854_v60, %s2608_s16 }
  0xf1   : > { %674 = vrot.lane.b32.xlu1 %v667_v62, %s2603_s11  ;;  %678 = vrot.lane.b32.xlu0 %v668_v6, %s2603_s11 }
  0xf5   : > { %669 = vrot.lane.b32.xlu0 %v2854_v60, %s2609_s17  ;;  %763 = vrot.lane.b32.xlu1 %v2854_v60, %s2601_s19 }
  0xf9   : > { %874 = vrot.lane.b32.xlu0 %v871_v11, %s2602_s10  ;;  %876 = vrot.lane.b32.xlu1 %v866_v12, %s2602_s10 }
  0xfd   : > { %872 = vrot.lane.b32.xlu0 %v865_v8, %s2602_s10  ;;  %867 = vrot.lane.b32.xlu1 %v2854_v60, %s3179_s18 }
 0x101   : > { %987 = vrot.lane.b32.xlu0 %v984_v19, %s3180_s29  ;;  %989 = vrot.lane.b32.xlu1 %v979_v20, %s3180_s29 }
 0x105   : > { %985 = vrot.lane.b32.xlu0 %v978_v16, %s3180_s29  ;;  %980 = vrot.lane.b32.xlu1 %v2854_v60, %s3178_s7  ;;  %s2614_s7 = smov 96   ;;  %s2177_s29 = scalar_lea.sflag [#allocation5], %s2787_s26 }
 0x109   : > { %1100 = vrot.lane.b32.xlu0 %v1097_v26, %s2601_s19  ;;  %1102 = vrot.lane.b32.xlu1 %v1092_v27, %s2601_s19 }
 0x10d   : > { %1098 = vrot.lane.b32.xlu0 %v1091_v23, %s2601_s19  ;;  %1093 = vrot.lane.b32.xlu1 %v2854_v60, %s2612_s12 }
 0x111   : > { %1213 = vrot.lane.b32.xlu0 %v1210_v31, %s2599_s27  ;;  %1215 = vrot.lane.b32.xlu1 %v1205_v32, %s2599_s27 }
 0x115   : > { %1211 = vrot.lane.b32.xlu0 %v1204_v29, %s2599_s27  ;;  %1206 = vrot.lane.b32.xlu1 %v2854_v60, %s2614_s7 }
 0x119   : > { %298 = vperm.xlu0 %2457, %v295_v34  }
 0x148   : > { %v331_v35 = vpop.permute.xlu1 %330 }
 0x14b   : > { %v329_v36 = vpop.permute.xlu0 %328 }
 0x14c   : > { %v334_v37 = vsel %vm332_vm7, %v329_v36, %v331_v35 }
 0x14d   : > { %2282 = vmatprep.subr.msk.mxu0 %vm339_vm8, %v334_v37 }
 0x14f   : > { %v447_v38 = vpop.permute.xlu1 %446  ;;  %v327_v39 = vpop.permute.xlu0 %326 }
 0x150   : > { %v333_v41 = vsel %vm332_vm7, %v327_v39, %v329_v36 }
 0x151   : > { %2283 = vmatpush1.msk.msra.mxu0 %vm339_vm8, %v333_v41 }
 0x152   : > { %2284 = vmatmul.mubr.msk.f32.vlgmr.msra.gmra.mrb[0].mxu0 %vm335_vm9, %v2854_v60 }
 0x153   : > { %v445_v43 = vpop.permute.xlu1 %444  ;;  %v449_v44 = vpop.permute.xlu0 %448  ;;  %523 = vmatprep.mubr.f32.mxu0 %v2598_v1 }
 0x154   : > { %v451_v45 = vsel %vm450_vm6, %v445_v43, %v447_v38  ;;  %v452_v48 = vsel %vm450_vm6, %v447_v38, %v449_v44 }
 0x155   : > { %2285 = vmatprep.subr.msk.mxu0 %vm339_vm8, %v452_v48 }
 0x156   : > { %2286 = vmatpush1.msk.msra.mxu0 %vm339_vm8, %v451_v45 }
 0x157   : > { %v562_v50 = vpop.permute.xlu1 %561  ;;  %v440_v52 = vpop.permute.xlu0 %439 }
 0x15a   : > { %2287 = vmatmul.mubr.msk.f32.vlgmr.msra.gmra.mrb[0].mxu0 %vm335_vm9, %v440_v52 }
 0x15b   : > { %v560_v53 = vpop.permute.xlu1 %559  ;;  %v564_v54 = vpop.permute.xlu0 %563  ;;  %638 = vmatprep.mubr.f32.mxu0 %v2598_v1 }
 0x15c   : > { %v566_v55 = vsel %vm565_vm5, %v560_v53, %v562_v50  ;;  %v567_v57 = vsel %vm565_vm5, %v562_v50, %v564_v54 }
 0x15d   : > { %2288 = vmatprep.subr.msk.mxu0 %vm339_vm8, %v567_v57 }
 0x15e   : > { %2289 = vmatpush1.msk.msra.mxu0 %vm339_vm8, %v566_v55 }
 0x15f   : > { %v677_v58 = vpop.permute.xlu1 %676  ;;  %v555_v60 = vpop.permute.xlu0 %554 }
 0x162   : > { %2290 = vmatmul.mubr.msk.f32.vlgmr.msra.gmra.mrb[0].mxu0 %vm335_vm9, %v555_v60 }
 0x163   : > { %v675_v61 = vpop.permute.xlu1 %674  ;;  %v679_v62 = vpop.permute.xlu0 %678  ;;  %753 = vmatprep.mubr.f32.mxu0 %v2598_v1 }
 0x164   : > { %v681_v0 = vsel %vm680_vm4, %v675_v61, %v677_v58  ;;  %v682_v2 = vsel %vm680_vm4, %v677_v58, %v679_v62  ;;  %v3003_v62 = vld [vmem:[%s3171_s4] sm:$0xf] }
 0x165   : > { %2291 = vmatprep.subr.msk.mxu0 %vm339_vm8, %v682_v2 }
 0x166   : > { %2292 = vmatpush1.msk.msra.mxu0 %vm339_vm8, %v681_v0 }
 0x167   : > { %v670_v4 = vpop.permute.xlu0 %669  ;;  %v764_v6 = vpop.permute.xlu1 %763  ;;  %2294 = vmatprep.subr.msk.mxu0 %vm339_vm8, %v766_v63 }
 0x16a   : > { %2293 = vmatmul.mubr.msk.f32.vlgmr.msra.gmra.mrb[0].mxu0 %vm335_vm9, %v670_v4 }
 0x16b   : > { %v875_v7 = vpop.permute.xlu0 %874  ;;  %v877_v8 = vpop.permute.xlu1 %876  ;;  %2295 = vmatpush1.msk.msra.mxu0 %vm339_vm8, %v2805_v15  ;;  %837 = vmatprep.mubr.f32.mxu0 %v2598_v1 }
 0x16c   : > { %v879_v10 = vsel %vm663_vm3, %v875_v7, %v877_v8 }
 0x16d   : > { %2297 = vmatprep.subr.msk.mxu0 %vm339_vm8, %v879_v10  ;;  %v1875_v10 = vld [vmem:[#allocation2 + $0xc] sm:$0xf] }
 0x16f   : > { %v873_v11 = vpop.permute.xlu0 %872  ;;  %v868_v12 = vpop.permute.xlu1 %867 }
 0x170   : > { %v878_v14 = vsel %vm663_vm3, %v873_v11, %v875_v7  ;;  %v1877_v11 = vmul.f32 %v1875_v10, %v2877_v9  ;;  %v1305_v9 = vld [vmem:[%s3172_s5] sm:$0xf] }
 0x172   : > { %2296 = vmatmul.mubr.msk.f32.vlgmr.msra.gmra.mrb[0].mxu0 %vm335_vm9, %v764_v6 }
 0x173   : > { %2298 = vmatpush1.msk.msra.mxu0 %vm339_vm8, %v878_v14  ;;  %v988_v16 = vpop.permute.xlu0 %987  ;;  %v990_v18 = vpop.permute.xlu1 %989  ;;  %950 = vmatprep.mubr.f32.mxu0 %v2598_v1 }
 0x174   : > { %v992_v19 = vsel %vm548_vm2, %v988_v16, %v990_v18 }
 0x175   : > { %2300 = vmatprep.subr.msk.mxu0 %vm339_vm8, %v992_v19 }
 0x177   : > { %v986_v20 = vpop.permute.xlu0 %985  ;;  %v981_v22 = vpop.permute.xlu1 %980 }
 0x178   : > { %v991_v23 = vsel %vm548_vm2, %v986_v20, %v988_v16 }
 0x17a   : > { %2299 = vmatmul.mubr.msk.f32.vlgmr.msra.gmra.mrb[0].mxu0 %vm335_vm9, %v868_v12  ;;  %v1971_v12 = vld [vmem:[#allocation2 + $0xc] sm:$0xf] }
 0x17b   : > { %2301 = vmatpush1.msk.msra.mxu0 %vm339_vm8, %v991_v23  ;;  %v1101_v25 = vpop.permute.xlu0 %1100  ;;  %v1103_v26 = vpop.permute.xlu1 %1102  ;;  %1063 = vmatprep.mubr.f32.mxu0 %v2598_v1  ;;  %v1973_v14 = vmul.f32 %v1971_v12, %v2892_v17 }
 0x17c   : > { %v1105_v27 = vsel %vm433_vm1, %v1101_v25, %v1103_v26 }
 0x17d   : > { %2303 = vmatprep.subr.msk.mxu0 %vm339_vm8, %v1105_v27 }
 0x17f   : > { %v1099_v29 = vpop.permute.xlu0 %1098  ;;  %v1094_v30 = vpop.permute.xlu1 %1093 }
 0x180   : > { %v1104_v31 = vsel %vm433_vm1, %v1099_v29, %v1101_v25 }
 0x182   : > { %2302 = vmatmul.mubr.msk.f32.vlgmr.msra.gmra.mrb[0].mxu0 %vm335_vm9, %v981_v22 }
 0x183   : > { %2304 = vmatpush1.msk.msra.mxu0 %vm339_vm8, %v1104_v31  ;;  %v1214_v32 = vpop.permute.xlu0 %1213  ;;  %v1216_v33 = vpop.permute.xlu1 %1215  ;;  %1176 = vmatprep.mubr.f32.mxu0 %v2598_v1 }
 0x184   : > { %v1218_v34 = vsel %vm317_vm0, %v1214_v32, %v1216_v33 }
 0x185   : > { %2308 = vmatprep.subr.msk.mxu0 %vm339_vm8, %v1218_v34 }
 0x187   : > { %v1212_v35 = vpop.permute.xlu0 %1211  ;;  %v1207_v37 = vpop.permute.xlu1 %1206 }
 0x188   : > { %v1217_v36 = vsel %vm317_vm0, %v1212_v35, %v1214_v32 }
 0x18a   : > { %2305 = vmatmul.mubr.msk.f32.vlgmr.msra.gmra.mrb[0].mxu0 %vm335_vm9, %v1094_v30 }
 0x18b   : > { %2309 = vmatpush1.msk.msra.mxu0 %vm339_vm8, %v1217_v36  ;;  %1289 = vmatprep.mubr.f32.mxu0 %v2598_v1 }
 0x192   : > { %2310 = vmatmul.mubr.msk.f32.vlgmr.msra.gmra.mrb[0].mxu0 %vm335_vm9, %v1207_v37 }
 0x198   : > { %v299_v38 = vpop.permute.xlu0 %298 }
 0x265   : > { %v1291_v39 = vpop.f32.mrb[0].mxu0 }
 0x266   : > { %v2345_v41 = vadd.f32 %v1291_v39, %v299_v38  ;;  %v1293_v43 = vpop.f32.mrb[1].mxu0 }
 0x267   : > { %v2346_v44 = vadd.f32 %v1293_v43, %v299_v38 }
 0x268   : > { %v1298_v45 = vmax.f32 %v2345_v41, 0.0 }
 0x269   : > { %v2987_v48 = vmax.f32 %v2346_v44, 0.0 }
 0x26b   : > { %v2990_v50 = vcombine.low %v1298_v45, %v2987_v48  ;;  %v2463_v45 = vcombine.low %v2987_v48, %v2987_v48 }
 0x26d   : > { %1304 = vst [vmem:[#allocation2 + $0x4] sm:$0xff] %v2990_v50  ;;  %v1972_v8 = vmul.f32 %v2990_v50, %v2900_v21 }
 0x274   : > { %v1311_v52 = vld [vmem:[#allocation2] sm:$0xff]  ;;  %v1407_v54 = vld [vmem:[#allocation2 + $0x8] sm:$0xf] }
 0x275   : > { %v1313_v53 = vmul.f32 %v1311_v52, %v2820_v42  ;;  %v1312_v57 = vld [vmem:[#allocation2 + $0x8] sm:$0xf]  ;;  %v1409_v58 = vmul.f32 %v1407_v54, %v2824_v46  ;;  %v1408_v61 = vmul.f32 %v1311_v52, %v2831_v49  ;;  %v1600_v4 = vmul.f32 %v1311_v52, %v2849_v59  ;;  %v1779_v59 = vld [vmem:[#allocation2 + $0xc] sm:$0xf] }
 0x276   : > { %v1314_v60 = vmul.f32 %v1312_v57, %v2816_v40  ;;  %v1503_v42 = vld [vmem:[#allocation2 + $0x8] sm:$0xf]  ;;  %v1504_v40 = vmul.f32 %v1311_v52, %v2837_v51  ;;  %v1781_v7 = vmul.f32 %v1779_v59, %v2863_v3  ;;  %v2068_v3 = vmul.f32 %v2990_v50, %v2914_v28  ;;  %v2067_v28 = vld [vmem:[#allocation2 + $0xc] sm:$0xf] }
 0x277   : > { %1318 = vrot.lane.b32.xlu0 %v1313_v53, %s2606_s15  ;;  %v1317_v55 = vcombine.high %v1313_v53, %v1313_v53  ;;  %v1414_v63 = vcombine.high %v1408_v61, %v1408_v61  ;;  %v1505_v46 = vmul.f32 %v1503_v42, %v2827_v47  ;;  %v1599_v49 = vld [vmem:[#allocation2 + $0x8] sm:$0xf]  ;;  %v1780_v47 = vmul.f32 %v2990_v50, %v2870_v5 }
 0x278   : > { %v1510_v0 = vcombine.high %v1504_v40, %v1504_v40  ;;  %v1601_v2 = vmul.f32 %v1599_v49, %v2842_v56  ;;  %v1606_v51 = vcombine.high %v1600_v4, %v1600_v4  ;;  %v1876_v56 = vmul.f32 %v2990_v50, %v2886_v13 }
 0x279   : > { %1320 = vrot.lane.b32.xlu1 %v1317_v55, %s2606_s15  ;;  %v1786_v6 = vcombine.high %v1780_v47, %v1780_v47  ;;  %v1978_v13 = vcombine.high %v1972_v8, %v1972_v8  ;;  %v2074_v21 = vcombine.high %v2068_v3, %v2068_v3  ;;  %v2069_v16 = vmul.f32 %v2067_v28, %v2906_v24 }
 0x27a   : > { %v1882_v5 = vcombine.high %v1876_v56, %v1876_v56 }
 0x27b   : > { %1419 = vrot.lane.b32.xlu0 %v1409_v58, %s2605_s8 }
 0x27d   : > { %1322 = vrot.lane.b32.xlu1 %v1314_v60, %s2606_s15 }
 0x27f   : > { %1410 = vrot.lane.b32.xlu0 %v3003_v62, %s2607_s30 }
 0x281   : > { %1417 = vrot.lane.b32.xlu1 %v1414_v63, %s2605_s8 }
 0x283   : > { %1515 = vrot.lane.b32.xlu0 %v1505_v46, %s2604_s20 }
 0x285   : > { %1415 = vrot.lane.b32.xlu1 %v1408_v61, %s2605_s8 }
 0x287   : > { %1506 = vrot.lane.b32.xlu0 %v3003_v62, %s2608_s16 }
 0x289   : > { %1513 = vrot.lane.b32.xlu1 %v1510_v0, %s2604_s20 }
 0x28b   : > { %1611 = vrot.lane.b32.xlu0 %v1601_v2, %s2603_s11 }
 0x28d   : > { %1511 = vrot.lane.b32.xlu1 %v1504_v40, %s2604_s20  ;;  %s3193_s20 = smov 113  }
 0x28f   : > { %1602 = vrot.lane.b32.xlu0 %v3003_v62, %s2609_s17 }
 0x291   : > { %1609 = vrot.lane.b32.xlu1 %v1606_v51, %s2603_s11 }
 0x293   : > { %1789 = vrot.lane.b32.xlu0 %v1786_v6, %s2602_s10 }
 0x295   : > { %1607 = vrot.lane.b32.xlu1 %v1600_v4, %s2603_s11  ;;  %s3194_s11 = smov 108  }
 0x297   : > { %1787 = vrot.lane.b32.xlu0 %v1780_v47, %s2602_s10 }
 0x299   : > { %1695 = vrot.lane.b32.xlu1 %v3003_v62, %s2601_s19 }
 0x29b   : > { %1885 = vrot.lane.b32.xlu0 %v1882_v5, %s3193_s20 }
 0x29d   : > { %1791 = vrot.lane.b32.xlu1 %v1781_v7, %s2602_s10  ;;  %s3195_s10 = smov 104  }
 0x29f   : > { %1883 = vrot.lane.b32.xlu0 %v1876_v56, %s3193_s20 }
 0x2a1   : > { %1782 = vrot.lane.b32.xlu1 %v3003_v62, %s3194_s11 }
 0x2a3   : > { %1981 = vrot.lane.b32.xlu0 %v1978_v13, %s2601_s19 }
 0x2a5   : > { %1887 = vrot.lane.b32.xlu1 %v1877_v11, %s3193_s20 }
 0x2a7   : > { %1979 = vrot.lane.b32.xlu0 %v1972_v8, %s2601_s19 }
 0x2a9   : > { %1878 = vrot.lane.b32.xlu1 %v3003_v62, %s3195_s10 }
 0x2ab   : > { %2077 = vrot.lane.b32.xlu0 %v2074_v21, %s2599_s27 }
 0x2ad   : > { %1983 = vrot.lane.b32.xlu1 %v1973_v14, %s2601_s19 }
 0x2af   : > { %2075 = vrot.lane.b32.xlu0 %v2068_v3, %s2599_s27 }
 0x2b1   : > { %1974 = vrot.lane.b32.xlu1 %v3003_v62, %s2612_s12  ;;  %s2344_s12 = sshll.u32 %s2672_s25, 7  ;;  %s2615_s25 = smov [#allocation8]  }
 0x2b2   : > { %s2526_s20 = sshll.u32 %s2615_s25, 4  ;;  %s2527_s20 = int_to_ptr.vmem [resolvable:$false] %s2526_s20 }
 0x2b3   : > { %1308 = vperm.xlu0 %2457, %v1305_v9   ;;  %s2528_s11 = scalar_lea.vmem %s2527_s20, 256 }
 0x2b5   : > { %2079 = vrot.lane.b32.xlu1 %v2069_v16, %s2599_s27  ;;  %s3196_s27 = sshll.u32 %s2787_s26, 3 }
 0x2b6   : > { %s282_s19 = scalar_lea.vmem [#allocation8], %s3196_s27 }
 0x2b7   : > { %s2191_s30 = sshll.u32 %s282_s19, 4  ;;  %s3125_s30 = int_to_ptr.vmem [resolvable:$true] %s2191_s30 }
 0x2b8   : > { %s2522_s18 = scalar_lea.vmem %s3125_s30, 128  ;;  %p2529_p10 = scmp.lt.s32.totalorder %s3125_s30, %s2527_s20 }
 0x2b9   : > { %2070 = vrot.lane.b32.xlu1 %v3003_v62, %s2614_s7  ;;  %s3123_s7 = scalar_lea.hbm %s3173_s6, %s2344_s12  ;;  %p2523_p4 = scmp.ne.s32.totalorder %s3125_s30, %s2522_s18 }
 0x2ba   : > { %p2530_p13 = scmp.lt.s32.totalorder %s2528_s11, %s2522_s18 }
 0x2bb   : > { %p2524_p6 = pnand %p2523_p4, %p2742_p12 }
 0x2bc   : > { %p2531_p3 = por %p2530_p13, %p2529_p10 }
 0x2bd   : > { %p2525_p8 = pneg %p2524_p6 }
 0x2bf   : > { %p2532_p7 = pnand %p2531_p3, %p2525_p8 }
 0x2e9   : > { %v1319_v17 = vpop.permute.xlu0 %1318 }
 0x2eb   : > { %v1321_v18 = vpop.permute.xlu1 %1320 }
 0x2ec   : > { %v1324_v25 = vsel %vm332_vm7, %v1319_v17, %v1321_v18 }
 0x2ed   : > { %v1420_v19 = vpop.permute.xlu0 %1419 }
 0x2ef   : > { %v1323_v20 = vpop.permute.xlu1 %1322 }
 0x2f0   : > { %v1325_v22 = vsel %vm332_vm7, %v1321_v18, %v1323_v20 }
 0x2f1   : > { %v1411_v23 = vpop.permute.xlu0 %1410  ;;  %2311 = vmatprep.subr.msk.mxu1 %vm339_vm8, %v1325_v22 }
 0x2f2   : > { %2312 = vmatpush1.msk.msra.mxu1 %vm339_vm8, %v1324_v25 }
 0x2f3   : > { %2313 = vmatmul.mubr.msk.f32.vlgmr.msra.gmra.mrb[0].mxu1 %vm335_vm9, %v3003_v62  ;;  %v1418_v24 = vpop.permute.xlu1 %1417 }
 0x2f4   : > { %v1422_v26 = vsel %vm450_vm6, %v1418_v24, %v1420_v19  ;;  %1493 = vmatprep.mubr.f32.mxu1 %v2598_v1 }
 0x2f5   : > { %v1516_v27 = vpop.permute.xlu0 %1515  ;;  %2314 = vmatprep.subr.msk.mxu1 %vm339_vm8, %v1422_v26 }
 0x2f7   : > { %v1416_v29 = vpop.permute.xlu1 %1415 }
 0x2f8   : > { %v1421_v30 = vsel %vm450_vm6, %v1416_v29, %v1418_v24 }
 0x2f9   : > { %v1507_v31 = vpop.permute.xlu0 %1506  ;;  %2315 = vmatpush1.msk.msra.mxu1 %vm339_vm8, %v1421_v30 }
 0x2fb   : > { %2316 = vmatmul.mubr.msk.f32.vlgmr.msra.gmra.mrb[0].mxu1 %vm335_vm9, %v1411_v23  ;;  %v1514_v32 = vpop.permute.xlu1 %1513 }
 0x2fc   : > { %v1518_v33 = vsel %vm565_vm5, %v1514_v32, %v1516_v27  ;;  %1589 = vmatprep.mubr.f32.mxu1 %v2598_v1 }
 0x2fd   : > { %v1612_v34 = vpop.permute.xlu0 %1611  ;;  %2317 = vmatprep.subr.msk.mxu1 %vm339_vm8, %v1518_v33 }
 0x2ff   : > { %v1512_v35 = vpop.permute.xlu1 %1511 }
 0x300   : > { %v1517_v36 = vsel %vm565_vm5, %v1512_v35, %v1514_v32 }
 0x301   : > { %v1603_v37 = vpop.permute.xlu0 %1602  ;;  %2318 = vmatpush1.msk.msra.mxu1 %vm339_vm8, %v1517_v36 }
 0x303   : > { %2319 = vmatmul.mubr.msk.f32.vlgmr.msra.gmra.mrb[0].mxu1 %vm335_vm9, %v1507_v31  ;;  %v1610_v38 = vpop.permute.xlu1 %1609 }
 0x304   : > { %v1614_v39 = vsel %vm680_vm4, %v1610_v38, %v1612_v34  ;;  %1685 = vmatprep.mubr.f32.mxu1 %v2598_v1 }
 0x305   : > { %v1790_v41 = vpop.permute.xlu0 %1789  ;;  %2320 = vmatprep.subr.msk.mxu1 %vm339_vm8, %v1614_v39 }
 0x307   : > { %v1608_v43 = vpop.permute.xlu1 %1607 }
 0x308   : > { %v1613_v44 = vsel %vm680_vm4, %v1608_v43, %v1610_v38 }
 0x309   : > { %v1788_v52 = vpop.permute.xlu0 %1787  ;;  %2321 = vmatpush1.msk.msra.mxu1 %vm339_vm8, %v1613_v44 }
 0x30a   : > { %2323 = vmatprep.subr.msk.mxu1 %vm339_vm8, %v2463_v45  ;;  %v1793_v48 = vsel %vm663_vm3, %v1788_v52, %v1790_v41 }
 0x30b   : > { %2322 = vmatmul.mubr.msk.f32.vlgmr.msra.gmra.mrb[0].mxu1 %vm335_vm9, %v1603_v37  ;;  %v1696_v53 = vpop.permute.xlu1 %1695 }
 0x30c   : > { %2324 = vmatpush1.msk.msra.mxu1 %vm339_vm8, %v2990_v50  ;;  %1769 = vmatprep.mubr.f32.mxu1 %v2598_v1 }
 0x30d   : > { %v1886_v54 = vpop.permute.xlu0 %1885 }
 0x30f   : > { %v1792_v55 = vpop.permute.xlu1 %1791 }
 0x310   : > { %v1794_v57 = vsel %vm663_vm3, %v1790_v41, %v1792_v55 }
 0x311   : > { %v1884_v58 = vpop.permute.xlu0 %1883  ;;  %2326 = vmatprep.subr.msk.mxu1 %vm339_vm8, %v1794_v57 }
 0x312   : > { %v1889_v42 = vsel %vm548_vm2, %v1884_v58, %v1886_v54 }
 0x313   : > { %2325 = vmatmul.mubr.msk.f32.vlgmr.msra.gmra.mrb[0].mxu1 %vm335_vm9, %v1696_v53  ;;  %v1783_v60 = vpop.permute.xlu1 %1782 }
 0x314   : > { %2327 = vmatpush1.msk.msra.mxu1 %vm339_vm8, %v1793_v48  ;;  %1865 = vmatprep.mubr.f32.mxu1 %v2598_v1 }
 0x315   : > { %v1982_v61 = vpop.permute.xlu0 %1981 }
 0x317   : > { %v1888_v50 = vpop.permute.xlu1 %1887 }
 0x318   : > { %v1890_v62 = vsel %vm548_vm2, %v1886_v54, %v1888_v50 }
 0x319   : > { %2329 = vmatprep.subr.msk.mxu1 %vm339_vm8, %v1890_v62  ;;  %v1980_v46 = vpop.permute.xlu0 %1979 }
 0x31a   : > { %v1985_v2 = vsel %vm433_vm1, %v1980_v46, %v1982_v61 }
 0x31b   : > { %2328 = vmatmul.mubr.msk.f32.vlgmr.msra.gmra.mrb[0].mxu1 %vm335_vm9, %v1783_v60  ;;  %v1879_v63 = vpop.permute.xlu1 %1878 }
 0x31c   : > { %2330 = vmatpush1.msk.msra.mxu1 %vm339_vm8, %v1889_v42  ;;  %1961 = vmatprep.mubr.f32.mxu1 %v2598_v1 }
 0x31d   : > { %v2078_v0 = vpop.permute.xlu0 %2077 }
 0x31f   : > { %v1984_v40 = vpop.permute.xlu1 %1983 }
 0x320   : > { %v1986_v49 = vsel %vm433_vm1, %v1982_v61, %v1984_v40 }
 0x321   : > { %2332 = vmatprep.subr.msk.mxu1 %vm339_vm8, %v1986_v49  ;;  %v2076_v51 = vpop.permute.xlu0 %2075 }
 0x322   : > { %v2081_v56 = vsel %vm317_vm0, %v2076_v51, %v2078_v0 }
 0x323   : > { %2331 = vmatmul.mubr.msk.f32.vlgmr.msra.gmra.mrb[0].mxu1 %vm335_vm9, %v1879_v63  ;;  %v1975_v4 = vpop.permute.xlu1 %1974 }
 0x324   : > { %2333 = vmatpush1.msk.msra.mxu1 %vm339_vm8, %v1985_v2  ;;  %2057 = vmatprep.mubr.f32.mxu1 %v2598_v1 }
 0x327   : > { %v2080_v47 = vpop.permute.xlu1 %2079 }
 0x328   : > { %v2082_v6 = vsel %vm317_vm0, %v2078_v0, %v2080_v47 }
 0x329   : > { %2335 = vmatprep.subr.msk.mxu1 %vm339_vm8, %v2082_v6 }
 0x32b   : > { %2334 = vmatmul.mubr.msk.f32.vlgmr.msra.gmra.mrb[0].mxu1 %vm335_vm9, %v1975_v4  ;;  %v2071_v59 = vpop.permute.xlu1 %2070 }
 0x32c   : > { %2336 = vmatpush1.msk.msra.mxu1 %vm339_vm8, %v2081_v56  ;;  %2153 = vmatprep.mubr.f32.mxu1 %v2598_v1 }
 0x332   : > { %v1309_v5 = vpop.permute.xlu0 %1308 }
 0x333   : > { %2337 = vmatmul.mubr.msk.f32.vlgmr.msra.gmra.mrb[0].mxu1 %vm335_vm9, %v2071_v59 }
 0x406   : > { %v2155_v7 = vpop.f32.mrb[0].mxu1 }
 0x407   : > { %v2347_v8 = vadd.f32 %v2155_v7, %v1309_v5  ;;  %v2157_v10 = vpop.f32.mrb[1].mxu1 }
 0x408   : > { %v2348_v13 = vadd.f32 %v2157_v10, %v1309_v5 }
 0x409   : > { %v2162_v11 = vmul.f32 0.5, %v2347_v8 }
 0x40a   : > { %v2163_v3 = vmul.f32 0.5, %v2348_v13 }
 0x40b   : > { %2459 = vtanh.f32 %v2162_v11 }
 0x40c   : > { %2461 = vtanh.f32 %v2163_v3 }
 0x415   : > { %v2460_v12 = vpop.eup %2459 }
 0x416   : > { %v2462_v21 = vpop.eup %2461  ;;  %v2166_v14 = vadd.f32 1.0, %v2460_v12 }
 0x417   : > { %v2167_v1 = vadd.f32 1.0, %v2462_v21 }
 0x418   : > { %v2168_v9 = vmul.f32 0.5, %v2166_v14 }
 0x419   : > { %v2169_v28 = vmul.f32 0.5, %v2167_v1 }
 0x41b   : > { %v2172_v16 = vcombine.low %v2168_v9, %v2169_v28 }
 0x41d   : > { %v2174_v17 = vmul.f32 %v2172_v16, %v2805_v15 }
 0x41f   : > { %2175 = vst [vmem:[%s282_s19] sm:$0xff] %v2174_v17 }
 0x420   : > { %2535 = shalt.err (!%p2532_p7)
}
 0x421   : > { %s2536_s26 = scalar_lea.hbm %s3123_s7, 128  ;;  %s2540_s15 = scalar_lea.hbm %s3173_s6, 256 }
 0x422   : > { %p2537_p9 = scmp.ne.s32.totalorder %s3123_s7, %s2536_s26  ;;  %p2541_p0 = scmp.lt.u32.totalorder %s3123_s7, %s3173_s6 }
 0x423   : > { %p2542_p11 = scmp.lt.u32.totalorder %s2540_s15, %s2536_s26  ;;  %p2544_p4 = scmp.lt.u32.totalorder %s2536_s26, %s3123_s7 }
 0x424   : > { %p2538_p2 = pnand %p2537_p9, %p2742_p12 }
 0x425   : > { %p2543_p1 = por %p2542_p11, %p2541_p0 }
 0x426   : > { %p2539_p5 = pneg %p2538_p2 }
 0x427   : > { %p2545_p6 = por %p2544_p4, %p2543_p1 }
 0x429   : > { %p2546_p8 = pnand %p2545_p6, %p2539_p5 }
 0x42b   : > { %2549 = shalt.err (!%p2546_p8)
}
 0x42c   : > { %2387 = dma.vmem_to_hbm [thread:$0]  (%p2742_p12), %s3125_s30, 128, %s3123_s7, %s2177_s29  }
 0x42d PF: > { %s2203_s19 = sand.u32 1, %s2580_s21   ;;  %p3197_p10 = scmp.ne.s32.totalorder %s3183_s28, 0 }
 0x42e   : > { %p3198_p13 = scmp.ge.s32.totalorder %s2592_s24, 2  ;;  %s2204_s16 = scalar_lea.sflag [#allocation5], %s2203_s19 }
 0x430   : > { %p2398_p3 = pnand %p3198_p13, %p3197_p10 }
 0x432   : > { %2575 = dma.done.wait (!%p2398_p3), %s2204_s16, 128  }
 0x433   : > { %2577 = vsyncadd (!%p2398_p3), %s2204_s16, 4294967168  ;;  %p20_p7 = scmp.ge.s32.totalorder %s2707_s9, 4   ;;  %s3199_s21 = smov %s2584_s22 }
 0x434   : > { %s3200_s22 = smov %s2588_s23  ;;  %s3201_s23 = smov %s2738_s13 }
 0x435   : > { %s3202_s24 = smov %s2707_s9  ;;  %22 = sbr.rel (!%p20_p7) target bundleno = 6 (0x6), region = 93 }
 0x43c   :  { %2209 = vsyncpa [#allocation4], 1 }
 0x43d   :  { %2211 = vsyncpa [#allocation4 + $0x1], 1 }
 0x43e   :  { %2212 = vsyncpa [#allocation7], 1 }
 0x43f   :  { %2213 = vsyncpa [#allocation5], 1 }
 0x440   :  { %2215 = vsyncpa [#allocation5 + $0x1], 1 }

</bundles_post_ra>
